<compile_context>
chip_gen: v5e
topology: v5e:2x2
jax: 0.10.0
libtpu: 0.0.40
codegen_flags: <defaults>
</compile_context>

<pallas_src>
import jax
import jax.numpy as jnp
from jax.experimental import pallas as pl
from jax.experimental.pallas import tpu as pltpu

EPS = 1e-5
VMEM_LIMIT = 32 * 1024 * 1024   # explicit; >= default scoped limit on v5e/v6e/v7x


def _pick_tile(hw, rows, budget_bytes=4 << 20, cap=16384):
    """Spatial tile: multiple of 128, sized so rows*T*4B (one combined input
    block) stays ~<= budget_bytes, keeping double-buffered working sets well
    under VMEM_LIMIT on all generations while growing for small channel counts."""
    hw128 = -(-hw // 128) * 128
    t = (budget_bytes // (4 * max(rows, 1))) // 128 * 128
    return int(max(128, min(t, cap, hw128)))


# ---------------------------------------------------------------------------
# Pass 1: accumulate per-batch partial stats of the bias-free pre-BN conv
#         outputs z_g = Wg@g, z_x = Wx@x  (channels on sublanes, spatial lanes).
#         Stats output is resident across the t axis (accumulator pattern).
# ---------------------------------------------------------------------------
def _pre_stats_kernel(g_ref, x_ref, wg_ref, wx_ref, stats_ref):
    zg = jnp.dot(wg_ref[...], g_ref[0], preferred_element_type=jnp.float32)
    zx = jnp.dot(wx_ref[...], x_ref[0], preferred_element_type=jnp.float32)
    part = jnp.concatenate(
        [jnp.sum(zg, axis=-1, keepdims=True),
         jnp.sum(zg * zg, axis=-1, keepdims=True),
         jnp.sum(zx, axis=-1, keepdims=True),
         jnp.sum(zx * zx, axis=-1, keepdims=True)], axis=-1)      # (F_int, 4)

    @pl.when(pl.program_id(1) == 0)
    def _():
        stats_ref[0] = part

    @pl.when(pl.program_id(1) > 0)
    def _():
        stats_ref[0] += part


# ---------------------------------------------------------------------------
# Pass 2: folded (conv+BN) branches with a single pre-summed bias, ReLU,
#         psi 1x1 projection (bias-free), write s and accumulate its stats.
# ---------------------------------------------------------------------------
def _psi_pre_kernel(g_ref, x_ref, wg_ref, wx_ref, b_ref, wp_ref, s_ref, stats_ref):
    p = jnp.dot(wg_ref[...], g_ref[0], preferred_element_type=jnp.float32)
    p = p + jnp.dot(wx_ref[...], x_ref[0], preferred_element_type=jnp.float32)
    p = jnp.maximum(p + b_ref[...], 0.0)                          # (F_int, T)
    if wp_ref.shape[0] == 1:
        # Large F_int: MXU projection (1, F_int) @ (F_int, T)
        s = jnp.dot(wp_ref[...], p, preferred_element_type=jnp.float32)
    else:
        # Small F_int: VPU broadcast-MAC + sublane reduce (keeps MXU free)
        s = jnp.sum(wp_ref[...] * p, axis=0, keepdims=True)       # (1, T)
    s_ref[0] = s

    part = jnp.concatenate(
        [jnp.sum(s, axis=-1, keepdims=True),
         jnp.sum(s * s, axis=-1, keepdims=True)], axis=-1)        # (1, 2)

    @pl.when(pl.program_id(1) == 0)
    def _():
        stats_ref[0] = part

    @pl.when(pl.program_id(1) > 0)
    def _():
        stats_ref[0] += part


# ---------------------------------------------------------------------------
# Pass 3: psi = sigmoid(a*s + c)  (folded psi-BN affine), out = x * psi.
# ---------------------------------------------------------------------------
def _gate_kernel(aff_ref, x_ref, s_ref, out_ref):
    a = aff_ref[0]                                                # SMEM scalars
    c = aff_ref[1]
    psi = jax.nn.sigmoid(s_ref[0] * a + c)                        # (1, T)
    out_ref[0] = (x_ref[0] * psi).astype(out_ref.dtype)


def attention_block(g, x, params):
    """g: (N, F_g, H, W), x: (N, F_l, H, W) float32 (NCHW). Returns NCHW."""
    N, Cg, H, W = g.shape
    _, Cl, _, _ = x.shape
    HW = H * W
    M = N * HW
    F_int = params["wg"].shape[0]

    T = _pick_tile(HW, Cg + Cl + 1)
    nt = -(-HW // T)
    HWp = nt * T

    # NCHW viewed as (N, C, H*W): a pure reshape (no transpose). Pad the spatial
    # axis once (zeros) if it is not a multiple of the 128-aligned tile.
    g3 = g.reshape(N, Cg, HW)
    x3 = x.reshape(N, Cl, HW)
    if HWp != HW:
        pad = ((0, 0), (0, 0), (0, HWp - HW))
        g3 = jnp.pad(g3, pad)
        x3 = jnp.pad(x3, pad)

    wg = params["wg"].astype(jnp.float32)                         # (F_int, Cg)
    wx = params["wx"].astype(jnp.float32)                         # (F_int, Cl)

    gspec = pl.BlockSpec((1, Cg, T), lambda n, t: (n, 0, t))
    xspec = pl.BlockSpec((1, Cl, T), lambda n, t: (n, 0, t))
    sspec = pl.BlockSpec((1, 1, T), lambda n, t: (n, 0, t))

    def wholespec(shape):
        nd = len(shape)
        return pl.BlockSpec(shape, lambda n, t, _nd=nd: (0,) * _nd)

    # Stats accumulate over t -> t axis must be "arbitrary"; batch stays parallel
    # (megacore split over n on v7x; avoid N=1 grids there if possible).
    acc_params = pltpu.CompilerParams(
        dimension_semantics=("parallel", "arbitrary"),
        vmem_limit_bytes=VMEM_LIMIT)
    par_params = pltpu.CompilerParams(
        dimension_semantics=("parallel", "parallel"),
        vmem_limit_bytes=VMEM_LIMIT)

    # ---- Pass 1: stats of bias-free pre-BN conv outputs ----------------------
    pre_stats = pl.pallas_call(
        _pre_stats_kernel,
        out_shape=jax.ShapeDtypeStruct((N, F_int, 4), jnp.float32),
        grid=(N, nt),
        in_specs=[gspec, xspec, wholespec(wg.shape), wholespec(wx.shape)],
        out_specs=pl.BlockSpec((1, F_int, 4), lambda n, t: (n, 0, 0)),
        compiler_params=acc_params,
        cost_estimate=pl.CostEstimate(
            flops=2 * N * HWp * (Cg + Cl) * F_int,
            transcendentals=0,
            bytes_accessed=(Cg + Cl) * N * HWp * 4 + N * F_int * 16),
    )(g3, x3, wg, wx)

    # ---- Tiny per-channel BN folding (plain JAX on <=F_int-long vectors) -----
    # Padded columns contribute exactly 0 (no bias in the kernel); divide by the
    # true element count M.  Conv bias only shifts the mean, which BN removes,
    # so it drops out of the fold entirely.
    tot = pre_stats.sum(axis=0)                                   # (F_int, 4)
    mean_zg = tot[:, 0] / M
    var_g = jnp.maximum(tot[:, 1] / M - mean_zg * mean_zg, 0.0)
    mean_zx = tot[:, 2] / M
    var_x = jnp.maximum(tot[:, 3] / M - mean_zx * mean_zx, 0.0)

    scale_g = params["gamma_g"] * jax.lax.rsqrt(var_g + EPS)
    scale_x = params["gamma_x"] * jax.lax.rsqrt(var_x + EPS)
    wg_f = wg * scale_g[:, None]
    wx_f = wx * scale_x[:, None]
    # Pre-summed combined bias for pass 2 (one broadcast-add instead of two).
    b_f = (params["beta_g"] - mean_zg * scale_g
           + params["beta_x"] - mean_zx * scale_x).reshape(F_int, 1).astype(jnp.float32)

    wp_row = params["wp"].reshape(1, F_int).astype(jnp.float32)
    wp_arg = wp_row if F_int > 32 else wp_row.reshape(F_int, 1)

    # ---- Pass 2: folded branches + ReLU + psi pre-activation s + its stats ---
    s_out, s_stats = pl.pallas_call(
        _psi_pre_kernel,
        out_shape=(jax.ShapeDtypeStruct((N, 1, HWp), jnp.float32),
                   jax.ShapeDtypeStruct((N, 1, 2), jnp.float32)),
        grid=(N, nt),
        in_specs=[gspec, xspec, wholespec(wg_f.shape), wholespec(wx_f.shape),
                  wholespec((F_int, 1)), wholespec(wp_arg.shape)],
        out_specs=(sspec, pl.BlockSpec((1, 1, 2), lambda n, t: (n, 0, 0))),
        compiler_params=acc_params,
        cost_estimate=pl.CostEstimate(
            flops=2 * N * HWp * (Cg + Cl + 1) * F_int + 3 * N * HWp * F_int,
            transcendentals=0,
            bytes_accessed=(Cg + Cl + 1) * N * HWp * 4),
    )(g3, x3, wg_f, wx_f, b_f, wp_arg)

    # ---- Fold psi BatchNorm into a scalar affine (psi conv bias cancels) -----
    st = s_stats.sum(axis=0)[0]                                   # (2,)
    pad_cols = N * (HWp - HW)
    # Padded (zero-input) columns of s are the constant wp . relu(b_f): remove exactly.
    s_pad = jnp.sum(wp_row[0] * jnp.maximum(b_f[:, 0], 0.0))
    sum_s = st[0] - pad_cols * s_pad
    sumsq_s = st[1] - pad_cols * s_pad * s_pad
    mean_s = sum_s / M
    var_s = jnp.maximum(sumsq_s / M - mean_s * mean_s, 0.0)
    a_p = params["gamma_p"][0] * jax.lax.rsqrt(var_s + EPS)
    c_p = params["beta_p"][0] - mean_s * a_p
    aff = jnp.stack([a_p, c_p]).astype(jnp.float32)               # (2,) -> SMEM

    # ---- Pass 3: sigmoid gate and elementwise multiply ------------------------
    out3 = pl.pallas_call(
        _gate_kernel,
        out_shape=jax.ShapeDtypeStruct((N, Cl, HWp), x.dtype),
        grid=(N, nt),
        in_specs=[pl.BlockSpec(memory_space=pltpu.MemorySpace.SMEM),
                  xspec, sspec],
        out_specs=xspec,
        compiler_params=par_params,
        cost_estimate=pl.CostEstimate(
            flops=4 * N * HWp * Cl,
            transcendentals=N * HWp,
            bytes_accessed=(2 * Cl + 1) * N * HWp * 4),
    )(aff, x3, s_out)

    if HWp != HW:
        out3 = out3[:, :, :HW]
    return out3.reshape(N, Cl, H, W)


def init_params(key, F_g, F_l, F_int):
    """Synthetic parameters matching Attention_block.__init__ shapes.

    Conv2d 1x1 weights (C_out, C_in, 1, 1) stored as (C_out, C_in) matrices;
    BatchNorm2d default init: gamma = 1, beta = 0.
    """
    k1, k2, k3, k4, k5, k6 = jax.random.split(key, 6)
    sg = 1.0 / jnp.sqrt(F_g)
    sx = 1.0 / jnp.sqrt(F_l)
    sp = 1.0 / jnp.sqrt(F_int)
    return dict(
        wg=jax.random.uniform(k1, (F_int, F_g), jnp.float32, -sg, sg),
        bg=jax.random.uniform(k2, (F_int,), jnp.float32, -sg, sg),
        gamma_g=jnp.ones((F_int,), jnp.float32),
        beta_g=jnp.zeros((F_int,), jnp.float32),
        wx=jax.random.uniform(k3, (F_int, F_l), jnp.float32, -sx, sx),
        bx=jax.random.uniform(k4, (F_int,), jnp.float32, -sx, sx),
        gamma_x=jnp.ones((F_int,), jnp.float32),
        beta_x=jnp.zeros((F_int,), jnp.float32),
        wp=jax.random.uniform(k5, (1, F_int), jnp.float32, -sp, sp),
        bp=jax.random.uniform(k6, (1,), jnp.float32, -sp, sp),
        gamma_p=jnp.ones((1,), jnp.float32),
        beta_p=jnp.zeros((1,), jnp.float32),
    )


def _reference(g, x, params):
    """Pure-JAX reference of the PyTorch forward (training-mode BatchNorm,
    including the conv biases, which BN provably cancels)."""
    def conv_bn(inp, w, b, gamma, beta):
        y = jnp.einsum("nchw,oc->nohw", inp, w) + b[None, :, None, None]
        mean = jnp.mean(y, axis=(0, 2, 3), keepdims=True)
        var = jnp.mean((y - mean) ** 2, axis=(0, 2, 3), keepdims=True)
        y_hat = (y - mean) / jnp.sqrt(var + EPS)
        return y_hat * gamma[None, :, None, None] + beta[None, :, None, None]

    g1 = conv_bn(g, params["wg"], params["bg"], params["gamma_g"], params["beta_g"])
    x1 = conv_bn(x, params["wx"], params["bx"], params["gamma_x"], params["beta_x"])
    p = jnp.maximum(g1 + x1, 0.0)
    psi = jax.nn.sigmoid(
        conv_bn(p, params["wp"], params["bp"], params["gamma_p"], params["beta_p"]))
    return x * psi


if __name__ == "__main__":
    F_g, F_l, F_int = 4, 4, 8
    N, H, W = 2, 16, 16

    key = jax.random.PRNGKey(0)
    kg, kx, kp = jax.random.split(key, 3)
    g = jax.random.normal(kg, (N, F_g, H, W), jnp.float32)
    x = jax.random.normal(kx, (N, F_l, H, W), jnp.float32)
    params = init_params(kp, F_g, F_l, F_int)

    attn = jax.jit(attention_block)
    out = jax.block_until_ready(attn(g, x, params))

    ref = _reference(g, x, params)
    assert out.shape == (N, F_l, H, W)
    assert jnp.allclose(out, ref, atol=1e-4, rtol=1e-4), "mismatch vs reference"

    print("KERNEL_OK")
</pallas_src>

<mosaic_0001>
module attributes {stable_mosaic.version = 11 : i64} {
  func.func @_pre_stats_kernel(%arg0: i32, %arg1: i32, %arg2: memref<1x4x256xf32, #tpu.memory_space<vmem>>, %arg3: memref<1x4x256xf32, #tpu.memory_space<vmem>>, %arg4: memref<8x4xf32, #tpu.memory_space<vmem>>, %arg5: memref<8x4xf32, #tpu.memory_space<vmem>>, %arg6: memref<1x8x4xf32, #tpu.memory_space<vmem>>) attributes {dimension_semantics = [#tpu.dimension_semantics<parallel>, #tpu.dimension_semantics<arbitrary>], iteration_bounds = array<i64: 2, 1>, scalar_prefetch = 0 : i64, scratch_operands = 0 : i64, tpu.core_type = #tpu.core_type<tc>, window_params = [{transform_indices = @transform_0, window_bounds = array<i64: 1, 4, 256>}, {transform_indices = @transform_1, window_bounds = array<i64: 1, 4, 256>}, {pipeline_mode = #tpu.pipeline_mode<synchronous>, transform_indices = @transform_2, window_bounds = array<i64: 8, 4>}, {pipeline_mode = #tpu.pipeline_mode<synchronous>, transform_indices = @transform_3, window_bounds = array<i64: 8, 4>}, {transform_indices = @transform_4, window_bounds = array<i64: 1, 8, 4>}]} {
    %c0 = arith.constant 0 : index
    %c0_0 = arith.constant 0 : index
    %0 = vector.load %arg4[%c0, %c0_0] : memref<8x4xf32, #tpu.memory_space<vmem>>, vector<8x4xf32>
    %c0_1 = arith.constant 0 : index
    %c0_2 = arith.constant 0 : index
    %c0_3 = arith.constant 0 : index
    %1 = vector.load %arg2[%c0_1, %c0_2, %c0_3] : memref<1x4x256xf32, #tpu.memory_space<vmem>>, vector<1x4x256xf32>
    %2 = vector.shape_cast %1 : vector<1x4x256xf32> to vector<4x256xf32>
    %cst = arith.constant dense<0.000000e+00> : vector<8x256xf32>
    %3 = tpu.matmul %0, %2, %cst {dimension_numbers = #tpu.dot_dimension_numbers<[1], [0], [0], [1], [0, 0, 1, 1], [], []>} : vector<8x4xf32>, vector<4x256xf32>, vector<8x256xf32> -> vector<8x256xf32>
    %c0_4 = arith.constant 0 : index
    %c0_5 = arith.constant 0 : index
    %4 = vector.load %arg5[%c0_4, %c0_5] : memref<8x4xf32, #tpu.memory_space<vmem>>, vector<8x4xf32>
    %c0_6 = arith.constant 0 : index
    %c0_7 = arith.constant 0 : index
    %c0_8 = arith.constant 0 : index
    %5 = vector.load %arg3[%c0_6, %c0_7, %c0_8] : memref<1x4x256xf32, #tpu.memory_space<vmem>>, vector<1x4x256xf32>
    %6 = vector.shape_cast %5 : vector<1x4x256xf32> to vector<4x256xf32>
    %cst_9 = arith.constant dense<0.000000e+00> : vector<8x256xf32>
    %7 = tpu.matmul %4, %6, %cst_9 {dimension_numbers = #tpu.dot_dimension_numbers<[1], [0], [0], [1], [0, 0, 1, 1], [], []>} : vector<8x4xf32>, vector<4x256xf32>, vector<8x256xf32> -> vector<8x256xf32>
    %cst_10 = arith.constant dense<0.000000e+00> : vector<8xf32>
    %8 = vector.multi_reduction <add>, %3, %cst_10 [1] : vector<8x256xf32> to vector<8xf32>
    %9 = vector.shape_cast %8 : vector<8xf32> to vector<8x1xf32>
    %10 = arith.mulf %3, %3 : vector<8x256xf32>
    %cst_11 = arith.constant dense<0.000000e+00> : vector<8xf32>
    %11 = vector.multi_reduction <add>, %10, %cst_11 [1] : vector<8x256xf32> to vector<8xf32>
    %12 = vector.shape_cast %11 : vector<8xf32> to vector<8x1xf32>
    %cst_12 = arith.constant dense<0.000000e+00> : vector<8xf32>
    %13 = vector.multi_reduction <add>, %7, %cst_12 [1] : vector<8x256xf32> to vector<8xf32>
    %14 = vector.shape_cast %13 : vector<8xf32> to vector<8x1xf32>
    %15 = arith.mulf %7, %7 : vector<8x256xf32>
    %cst_13 = arith.constant dense<0.000000e+00> : vector<8xf32>
    %16 = vector.multi_reduction <add>, %15, %cst_13 [1] : vector<8x256xf32> to vector<8xf32>
    %17 = vector.shape_cast %16 : vector<8xf32> to vector<8x1xf32>
    %18 = tpu.concatenate %9, %12, %14, %17 in 1 : vector<8x1xf32>, vector<8x1xf32>, vector<8x1xf32>, vector<8x1xf32> -> vector<8x4xf32>
    %c0_i32 = arith.constant 0 : i32
    %19 = arith.cmpi eq, %arg1, %c0_i32 : i32
    %20 = arith.extui %19 : i1 to i32
    %c0_i32_14 = arith.constant 0 : i32
    %21 = arith.cmpi ne, %20, %c0_i32_14 : i32
    scf.if %21 {
      %c0_17 = arith.constant 0 : index
      %c0_18 = arith.constant 0 : index
      %c0_19 = arith.constant 0 : index
      %25 = vector.load %arg6[%c0_17, %c0_18, %c0_19] : memref<1x8x4xf32, #tpu.memory_space<vmem>>, vector<1x8x4xf32>
      %26 = vector.shape_cast %25 : vector<1x8x4xf32> to vector<8x4xf32>
      %27 = vector.shape_cast %18 : vector<8x4xf32> to vector<1x8x4xf32>
      tpu.vector_store %arg6[%c0_17, %c0_18, %c0_19], %27 {strides = array<i32>} : memref<1x8x4xf32, #tpu.memory_space<vmem>>, vector<1x8x4xf32>,
    } else {
    }
    %c0_i32_15 = arith.constant 0 : i32
    %22 = arith.cmpi sgt, %arg1, %c0_i32_15 : i32
    %23 = arith.extui %22 : i1 to i32
    %c0_i32_16 = arith.constant 0 : i32
    %24 = arith.cmpi ne, %23, %c0_i32_16 : i32
    scf.if %24 {
      %c0_17 = arith.constant 0 : index
      %c0_18 = arith.constant 0 : index
      %c0_19 = arith.constant 0 : index
      %25 = vector.load %arg6[%c0_17, %c0_18, %c0_19] : memref<1x8x4xf32, #tpu.memory_space<vmem>>, vector<1x8x4xf32>
      %26 = vector.shape_cast %25 : vector<1x8x4xf32> to vector<8x4xf32>
      %27 = arith.addf %26, %18 : vector<8x4xf32>
      %c0_20 = arith.constant 0 : index
      %c0_21 = arith.constant 0 : index
      %c0_22 = arith.constant 0 : index
      %28 = vector.load %arg6[%c0_20, %c0_21, %c0_22] : memref<1x8x4xf32, #tpu.memory_space<vmem>>, vector<1x8x4xf32>
      %29 = vector.shape_cast %28 : vector<1x8x4xf32> to vector<8x4xf32>
      %30 = vector.shape_cast %27 : vector<8x4xf32> to vector<1x8x4xf32>
      tpu.vector_store %arg6[%c0_20, %c0_21, %c0_22], %30 {strides = array<i32>} : memref<1x8x4xf32, #tpu.memory_space<vmem>>, vector<1x8x4xf32>,
    } else {
    }
    return
  }
  func.func @transform_0(%arg0: i32, %arg1: i32) -> (i32, i32, i32) {
    %c0_i32 = arith.constant 0 : i32
    %c0_i32_0 = arith.constant 0 : i32
    return %arg0, %c0_i32, %arg1 : i32, i32, i32
  }
  func.func @transform_1(%arg0: i32, %arg1: i32) -> (i32, i32, i32) {
    %c0_i32 = arith.constant 0 : i32
    %c0_i32_0 = arith.constant 0 : i32
    return %arg0, %c0_i32, %arg1 : i32, i32, i32
  }
  func.func @transform_2(%arg0: i32, %arg1: i32) -> (i32, i32) {
    %c0_i32 = arith.constant 0 : i32
    %c0_i32_0 = arith.constant 0 : i32
    %c0_i32_1 = arith.constant 0 : i32
    return %c0_i32, %c0_i32_0 : i32, i32
  }
  func.func @transform_3(%arg0: i32, %arg1: i32) -> (i32, i32) {
    %c0_i32 = arith.constant 0 : i32
    %c0_i32_0 = arith.constant 0 : i32
    %c0_i32_1 = arith.constant 0 : i32
    return %c0_i32, %c0_i32_0 : i32, i32
  }
  func.func @transform_4(%arg0: i32, %arg1: i32) -> (i32, i32, i32) {
    %c0_i32 = arith.constant 0 : i32
    %c0_i32_0 = arith.constant 0 : i32
    %c0_i32_1 = arith.constant 0 : i32
    return %arg0, %c0_i32, %c0_i32_0 : i32, i32, i32
  }
}

module attributes {stable_mosaic.version = 11 : i64} {
  func.func @_psi_pre_kernel(%arg0: i32, %arg1: i32, %arg2: memref<1x4x256xf32, #tpu.memory_space<vmem>>, %arg3: memref<1x4x256xf32, #tpu.memory_space<vmem>>, %arg4: memref<8x4xf32, #tpu.memory_space<vmem>>, %arg5: memref<8x4xf32, #tpu.memory_space<vmem>>, %arg6: memref<8x1xf32, #tpu.memory_space<vmem>>, %arg7: memref<8x1xf32, #tpu.memory_space<vmem>>, %arg8: memref<1x1x256xf32, #tpu.memory_space<vmem>>, %arg9: memref<1x1x2xf32, #tpu.memory_space<vmem>>) attributes {dimension_semantics = [#tpu.dimension_semantics<parallel>, #tpu.dimension_semantics<arbitrary>], iteration_bounds = array<i64: 2, 1>, scalar_prefetch = 0 : i64, scratch_operands = 0 : i64, tpu.core_type = #tpu.core_type<tc>, window_params = [{transform_indices = @transform_0, window_bounds = array<i64: 1, 4, 256>}, {transform_indices = @transform_1, window_bounds = array<i64: 1, 4, 256>}, {pipeline_mode = #tpu.pipeline_mode<synchronous>, transform_indices = @transform_2, window_bounds = array<i64: 8, 4>}, {pipeline_mode = #tpu.pipeline_mode<synchronous>, transform_indices = @transform_3, window_bounds = array<i64: 8, 4>}, {pipeline_mode = #tpu.pipeline_mode<synchronous>, transform_indices = @transform_4, window_bounds = array<i64: 8, 1>}, {pipeline_mode = #tpu.pipeline_mode<synchronous>, transform_indices = @transform_5, window_bounds = array<i64: 8, 1>}, {transform_indices = @transform_6, window_bounds = array<i64: 1, 1, 256>}, {transform_indices = @transform_7, window_bounds = array<i64: 1, 1, 2>}]} {
    %c0 = arith.constant 0 : index
    %c0_0 = arith.constant 0 : index
    %0 = vector.load %arg4[%c0, %c0_0] : memref<8x4xf32, #tpu.memory_space<vmem>>, vector<8x4xf32>
    %c0_1 = arith.constant 0 : index
    %c0_2 = arith.constant 0 : index
    %c0_3 = arith.constant 0 : index
    %1 = vector.load %arg2[%c0_1, %c0_2, %c0_3] : memref<1x4x256xf32, #tpu.memory_space<vmem>>, vector<1x4x256xf32>
    %2 = vector.shape_cast %1 : vector<1x4x256xf32> to vector<4x256xf32>
    %cst = arith.constant dense<0.000000e+00> : vector<8x256xf32>
    %3 = tpu.matmul %0, %2, %cst {dimension_numbers = #tpu.dot_dimension_numbers<[1], [0], [0], [1], [0, 0, 1, 1], [], []>} : vector<8x4xf32>, vector<4x256xf32>, vector<8x256xf32> -> vector<8x256xf32>
    %c0_4 = arith.constant 0 : index
    %c0_5 = arith.constant 0 : index
    %4 = vector.load %arg5[%c0_4, %c0_5] : memref<8x4xf32, #tpu.memory_space<vmem>>, vector<8x4xf32>
    %c0_6 = arith.constant 0 : index
    %c0_7 = arith.constant 0 : index
    %c0_8 = arith.constant 0 : index
    %5 = vector.load %arg3[%c0_6, %c0_7, %c0_8] : memref<1x4x256xf32, #tpu.memory_space<vmem>>, vector<1x4x256xf32>
    %6 = vector.shape_cast %5 : vector<1x4x256xf32> to vector<4x256xf32>
    %cst_9 = arith.constant dense<0.000000e+00> : vector<8x256xf32>
    %7 = tpu.matmul %4, %6, %cst_9 {dimension_numbers = #tpu.dot_dimension_numbers<[1], [0], [0], [1], [0, 0, 1, 1], [], []>} : vector<8x4xf32>, vector<4x256xf32>, vector<8x256xf32> -> vector<8x256xf32>
    %8 = arith.addf %3, %7 : vector<8x256xf32>
    %c0_10 = arith.constant 0 : index
    %c0_11 = arith.constant 0 : index
    %9 = vector.load %arg6[%c0_10, %c0_11] : memref<8x1xf32, #tpu.memory_space<vmem>>, vector<8x1xf32>
    %10 = vector.broadcast %9 : vector<8x1xf32> to vector<8x256xf32>
    %11 = arith.addf %8, %10 : vector<8x256xf32>
    %cst_12 = arith.constant 0.000000e+00 : f32
    %12 = vector.broadcast %cst_12 : f32 to vector<8x256xf32>
    %13 = arith.maximumf %11, %12 : vector<8x256xf32>
    %c0_13 = arith.constant 0 : index
    %c0_14 = arith.constant 0 : index
    %14 = vector.load %arg7[%c0_13, %c0_14] : memref<8x1xf32, #tpu.memory_space<vmem>>, vector<8x1xf32>
    %15 = vector.broadcast %14 : vector<8x1xf32> to vector<8x256xf32>
    %16 = arith.mulf %15, %13 : vector<8x256xf32>
    %cst_15 = arith.constant dense<0.000000e+00> : vector<256xf32>
    %17 = vector.multi_reduction <add>, %16, %cst_15 [0] : vector<8x256xf32> to vector<256xf32>
    %18 = vector.shape_cast %17 : vector<256xf32> to vector<1x256xf32>
    %c0_16 = arith.constant 0 : index
    %c0_17 = arith.constant 0 : index
    %c0_18 = arith.constant 0 : index
    %19 = vector.load %arg8[%c0_16, %c0_17, %c0_18] : memref<1x1x256xf32, #tpu.memory_space<vmem>>, vector<1x1x256xf32>
    %20 = vector.shape_cast %19 : vector<1x1x256xf32> to vector<1x256xf32>
    %21 = vector.shape_cast %18 : vector<1x256xf32> to vector<1x1x256xf32>
    tpu.vector_store %arg8[%c0_16, %c0_17, %c0_18], %21 {strides = array<i32>} : memref<1x1x256xf32, #tpu.memory_space<vmem>>, vector<1x1x256xf32>,
    %cst_19 = arith.constant dense<0.000000e+00> : vector<1xf32>
    %22 = vector.multi_reduction <add>, %18, %cst_19 [1] : vector<1x256xf32> to vector<1xf32>
    %23 = vector.shape_cast %22 : vector<1xf32> to vector<1x1xf32>
    %24 = arith.mulf %18, %18 : vector<1x256xf32>
    %cst_20 = arith.constant dense<0.000000e+00> : vector<1xf32>
    %25 = vector.multi_reduction <add>, %24, %cst_20 [1] : vector<1x256xf32> to vector<1xf32>
    %26 = vector.shape_cast %25 : vector<1xf32> to vector<1x1xf32>
    %27 = tpu.concatenate %23, %26 in 1 : vector<1x1xf32>, vector<1x1xf32> -> vector<1x2xf32>
    %c0_i32 = arith.constant 0 : i32
    %28 = arith.cmpi eq, %arg1, %c0_i32 : i32
    %29 = arith.extui %28 : i1 to i32
    %c0_i32_21 = arith.constant 0 : i32
    %30 = arith.cmpi ne, %29, %c0_i32_21 : i32
    scf.if %30 {
      %c0_24 = arith.constant 0 : index
      %c0_25 = arith.constant 0 : index
      %c0_26 = arith.constant 0 : index
      %34 = vector.load %arg9[%c0_24, %c0_25, %c0_26] : memref<1x1x2xf32, #tpu.memory_space<vmem>>, vector<1x1x2xf32>
      %35 = vector.shape_cast %34 : vector<1x1x2xf32> to vector<1x2xf32>
      %36 = vector.shape_cast %27 : vector<1x2xf32> to vector<1x1x2xf32>
      tpu.vector_store %arg9[%c0_24, %c0_25, %c0_26], %36 {strides = array<i32>} : memref<1x1x2xf32, #tpu.memory_space<vmem>>, vector<1x1x2xf32>,
    } else {
    }
    %c0_i32_22 = arith.constant 0 : i32
    %31 = arith.cmpi sgt, %arg1, %c0_i32_22 : i32
    %32 = arith.extui %31 : i1 to i32
    %c0_i32_23 = arith.constant 0 : i32
    %33 = arith.cmpi ne, %32, %c0_i32_23 : i32
    scf.if %33 {
      %c0_24 = arith.constant 0 : index
      %c0_25 = arith.constant 0 : index
      %c0_26 = arith.constant 0 : index
      %34 = vector.load %arg9[%c0_24, %c0_25, %c0_26] : memref<1x1x2xf32, #tpu.memory_space<vmem>>, vector<1x1x2xf32>
      %35 = vector.shape_cast %34 : vector<1x1x2xf32> to vector<1x2xf32>
      %36 = arith.addf %35, %27 : vector<1x2xf32>
      %c0_27 = arith.constant 0 : index
      %c0_28 = arith.constant 0 : index
      %c0_29 = arith.constant 0 : index
      %37 = vector.load %arg9[%c0_27, %c0_28, %c0_29] : memref<1x1x2xf32, #tpu.memory_space<vmem>>, vector<1x1x2xf32>
      %38 = vector.shape_cast %37 : vector<1x1x2xf32> to vector<1x2xf32>
      %39 = vector.shape_cast %36 : vector<1x2xf32> to vector<1x1x2xf32>
      tpu.vector_store %arg9[%c0_27, %c0_28, %c0_29], %39 {strides = array<i32>} : memref<1x1x2xf32, #tpu.memory_space<vmem>>, vector<1x1x2xf32>,
    } else {
    }
    return
  }
  func.func @transform_0(%arg0: i32, %arg1: i32) -> (i32, i32, i32) {
    %c0_i32 = arith.constant 0 : i32
    %c0_i32_0 = arith.constant 0 : i32
    return %arg0, %c0_i32, %arg1 : i32, i32, i32
  }
  func.func @transform_1(%arg0: i32, %arg1: i32) -> (i32, i32, i32) {
    %c0_i32 = arith.constant 0 : i32
    %c0_i32_0 = arith.constant 0 : i32
    return %arg0, %c0_i32, %arg1 : i32, i32, i32
  }
  func.func @transform_2(%arg0: i32, %arg1: i32) -> (i32, i32) {
    %c0_i32 = arith.constant 0 : i32
    %c0_i32_0 = arith.constant 0 : i32
    %c0_i32_1 = arith.constant 0 : i32
    return %c0_i32, %c0_i32_0 : i32, i32
  }
  func.func @transform_3(%arg0: i32, %arg1: i32) -> (i32, i32) {
    %c0_i32 = arith.constant 0 : i32
    %c0_i32_0 = arith.constant 0 : i32
    %c0_i32_1 = arith.constant 0 : i32
    return %c0_i32, %c0_i32_0 : i32, i32
  }
  func.func @transform_4(%arg0: i32, %arg1: i32) -> (i32, i32) {
    %c0_i32 = arith.constant 0 : i32
    %c0_i32_0 = arith.constant 0 : i32
    %c0_i32_1 = arith.constant 0 : i32
    return %c0_i32, %c0_i32_0 : i32, i32
  }
  func.func @transform_5(%arg0: i32, %arg1: i32) -> (i32, i32) {
    %c0_i32 = arith.constant 0 : i32
    %c0_i32_0 = arith.constant 0 : i32
    %c0_i32_1 = arith.constant 0 : i32
    return %c0_i32, %c0_i32_0 : i32, i32
  }
  func.func @transform_6(%arg0: i32, %arg1: i32) -> (i32, i32, i32) {
    %c0_i32 = arith.constant 0 : i32
    %c0_i32_0 = arith.constant 0 : i32
    return %arg0, %c0_i32, %arg1 : i32, i32, i32
  }
  func.func @transform_7(%arg0: i32, %arg1: i32) -> (i32, i32, i32) {
    %c0_i32 = arith.constant 0 : i32
    %c0_i32_0 = arith.constant 0 : i32
    %c0_i32_1 = arith.constant 0 : i32
    return %arg0, %c0_i32, %c0_i32_0 : i32, i32, i32
  }
}

module attributes {stable_mosaic.version = 11 : i64} {
  func.func @_gate_kernel(%arg0: i32, %arg1: i32, %arg2: memref<2xf32, #tpu.memory_space<smem>>, %arg3: memref<1x4x256xf32, #tpu.memory_space<vmem>>, %arg4: memref<1x1x256xf32, #tpu.memory_space<vmem>>, %arg5: memref<1x4x256xf32, #tpu.memory_space<vmem>>) attributes {dimension_semantics = [#tpu.dimension_semantics<parallel>, #tpu.dimension_semantics<parallel>], iteration_bounds = array<i64: 2, 1>, scalar_prefetch = 0 : i64, scratch_operands = 0 : i64, tpu.core_type = #tpu.core_type<tc>, window_params = [{transform_indices = @transform_0, window_bounds = array<i64: 2>}, {transform_indices = @transform_1, window_bounds = array<i64: 1, 4, 256>}, {transform_indices = @transform_2, window_bounds = array<i64: 1, 1, 256>}, {transform_indices = @transform_3, window_bounds = array<i64: 1, 4, 256>}]} {
    %c0 = arith.constant 0 : index
    %0 = memref.load %arg2[%c0] : memref<2xf32, #tpu.memory_space<smem>>
    %c1 = arith.constant 1 : index
    %1 = memref.load %arg2[%c1] : memref<2xf32, #tpu.memory_space<smem>>
    %c0_0 = arith.constant 0 : index
    %c0_1 = arith.constant 0 : index
    %c0_2 = arith.constant 0 : index
    %2 = vector.load %arg4[%c0_0, %c0_1, %c0_2] : memref<1x1x256xf32, #tpu.memory_space<vmem>>, vector<1x1x256xf32>
    %3 = vector.shape_cast %2 : vector<1x1x256xf32> to vector<1x256xf32>
    %4 = vector.broadcast %0 : f32 to vector<1x256xf32>
    %5 = arith.mulf %3, %4 : vector<1x256xf32>
    %6 = vector.broadcast %1 : f32 to vector<1x256xf32>
    %7 = arith.addf %5, %6 : vector<1x256xf32>
    %8 = arith.negf %7 : vector<1x256xf32>
    %9 = math.exp %8 : vector<1x256xf32>
    %cst = arith.constant 1.000000e+00 : f32
    %10 = vector.broadcast %cst : f32 to vector<1x256xf32>
    %11 = arith.addf %10, %9 : vector<1x256xf32>
    %12 = arith.divf %10, %11 : vector<1x256xf32>
    %c0_3 = arith.constant 0 : index
    %c0_4 = arith.constant 0 : index
    %c0_5 = arith.constant 0 : index
    %13 = vector.load %arg3[%c0_3, %c0_4, %c0_5] : memref<1x4x256xf32, #tpu.memory_space<vmem>>, vector<1x4x256xf32>
    %14 = vector.shape_cast %13 : vector<1x4x256xf32> to vector<4x256xf32>
    %15 = vector.broadcast %12 : vector<1x256xf32> to vector<4x256xf32>
    %16 = arith.mulf %14, %15 : vector<4x256xf32>
    %c0_6 = arith.constant 0 : index
    %c0_7 = arith.constant 0 : index
    %c0_8 = arith.constant 0 : index
    %17 = vector.load %arg5[%c0_6, %c0_7, %c0_8] : memref<1x4x256xf32, #tpu.memory_space<vmem>>, vector<1x4x256xf32>
    %18 = vector.shape_cast %17 : vector<1x4x256xf32> to vector<4x256xf32>
    %19 = vector.shape_cast %16 : vector<4x256xf32> to vector<1x4x256xf32>
    tpu.vector_store %arg5[%c0_6, %c0_7, %c0_8], %19 {strides = array<i32>} : memref<1x4x256xf32, #tpu.memory_space<vmem>>, vector<1x4x256xf32>,
    return
  }
  func.func @transform_0(%arg0: i32, %arg1: i32) -> i32 {
    %c0_i32 = arith.constant 0 : i32
    %c0_i32_0 = arith.constant 0 : i32
    return %c0_i32 : i32
  }
  func.func @transform_1(%arg0: i32, %arg1: i32) -> (i32, i32, i32) {
    %c0_i32 = arith.constant 0 : i32
    %c0_i32_0 = arith.constant 0 : i32
    return %arg0, %c0_i32, %arg1 : i32, i32, i32
  }
  func.func @transform_2(%arg0: i32, %arg1: i32) -> (i32, i32, i32) {
    %c0_i32 = arith.constant 0 : i32
    %c0_i32_0 = arith.constant 0 : i32
    return %arg0, %c0_i32, %arg1 : i32, i32, i32
  }
  func.func @transform_3(%arg0: i32, %arg1: i32) -> (i32, i32, i32) {
    %c0_i32 = arith.constant 0 : i32
    %c0_i32_0 = arith.constant 0 : i32
    return %arg0, %c0_i32, %arg1 : i32, i32, i32
  }
}

</mosaic_0001>

<bundles_post_ra>
// kernel: attention_block.5
= control target key start
LH: loop header
LB: loop body
LE: loop exit
PB: predicated region body
PF: predicated region fallthrough
CT: control target
= control target key end

     0   :  { %8 = vsyncpa [#allocation3], 0  ;;  %s528_s12 = smov 0   ;;  %s530_s13 = smov 0   ;;  %s572_s0 = inlined_call_operand.vmem [shape: f32[2], index: 0, kind: input, shape index: {}]   ;;  %s573_s1 = inlined_call_operand.vmem [shape: f32[2,4,256], index: 1, kind: input, shape index: {}]   ;;  %s574_s2 = inlined_call_operand.vmem [shape: f32[2,1,256], index: 2, kind: input, shape index: {}]   ;;  %s575_s3 = inlined_call_operand.vmem [shape: f32[2,4,256], index: 3, kind: output, shape index: {}]  }
   0x1   :  { %s532_s14 = smov 0  }
   0x2 LB: > { %s407_s15 = sadd.s32 4294967295, %s505_s14   ;;  %s26_s16 = sadd.s32 1, %s501_s13  ;;  %s505_s14 = sphi %s532_s14, %s14_s14   ;;  %s501_s13 = sphi %s530_s13, %s577_s13   ;;  %s497_s12 = sphi %s528_s12, %s576_s12  }
   0x3   : > { %p28_p0 = scmp.ge.s32.totalorder %s26_s16, 2  ;;  %p409_p1 = scmp.ge.s32.totalorder %s505_s14, 1 }
   0x4   : > { %p136_p2 = scmp.lt.s32.totalorder %s505_s14, 3  ;;  %p433_p4 = scmp.eq.s32.totalorder %s407_s15, 0 }
   0x5   : > { %s579_s16 = smov (%p28_p0, %s26_s16), 0  ;;  %s148_s19 = sshll.u32 %s572_s0, 4  ;;  %s149_s19 = int_to_ptr.vmem [resolvable:$true] %s148_s19 }
   0x6   : > { %p137_p3 = pnand %p409_p1, %p136_p2  ;;  %s507_s20 = smov [#allocation2]  }
   0x8   : > { %p429_p5 = pneg %p137_p3  ;;  %186 = sbr.rel (%p137_p3) target bundleno = 63 (0x3f), region = 32 }
   0xa   : > { %p430_p6 = pnand %p433_p4, %p429_p5 }
   0xc   : > { %432 = dma.vmem_to_smem (!%p430_p6), %s149_s19, 16, %s507_s20, [#allocation3]  }
   0xd   : > { %492 = dma.done.wait (%p433_p4), [#allocation3], 16  }
   0xe   : > { %494 = vsyncadd (%p433_p4), [#allocation3], 4294967280 }
   0xf   : > { %193 = sfence }
  0x10   : > { %p229_p7 = scmp.lt.s32.totalorder %s497_s12, 1  ;;  %s257_s21 = sld [smem:[#allocation2]]  ;;  %vm288_vm4 = vcmask 1043456  }
  0x11   : > { %s419_s22 = sld [smem:[#allocation2 + $0x1]] }
  0x12   : > { %s581_s12 = smov (!%p229_p7, %s497_s12), 1 }
  0x13   : > { %s416_s23 = sshll.u32 %s581_s12, 1  ;;  %s423_s27 = sshll.u32 %s581_s12, 3 }
  0x14   : > { %s245_s26 = scalar_lea.vmem %s574_s2, %s416_s23  ;;  %s236_s30 = scalar_lea.vmem %s573_s1, %s423_s27 }
  0x15   : > { %v259_v0 = vld [vmem:[%s245_s26] sm:$0x3]  ;;  %s255_s6 = scalar_lea.vmem %s575_s3, %s423_s27 }
  0x16   : > { %v260_v1 = vstv %s257_s21  ;;  %v283_v20 = vld [vmem:[%s236_s30] sm:$0xff] }
  0x17   : > { %v261_v2 = vmul.f32 %v260_v1, %v259_v0  ;;  %v262_v3 = vstv %s419_s22 }
  0x19   : > { %v263_v4 = vadd.f32 %v262_v3, %v261_v2 }
  0x1b   : > { %v420_v5 = vmul.f32 -1.442695, %v263_v4 }
  0x1d   : > { %460 = vpow2.f32 %v420_v5 }
  0x23   : > { %v461_v6 = vpop.eup %460 }
  0x24   : > { %v267_v7 = vadd.f32 1.0, %v461_v6 }
  0x26   : > { %462 = vrcp.f32 %v267_v7  ;;  %v279_v10 = vand.u32 2147483648, %v267_v7  ;;  %vm273_vm0 = vweird.f32 %v267_v7  ;;  %v277_v12 = vand.u32 2147483647, %v267_v7 }
  0x28   : > { %v280_v14 = vor.u32 1.1754944e-38, %v279_v10  ;;  %vm278_vm3 = vcmp.eq.f32.partialorder %v277_v12, 8.507059e+37 }
  0x2c   : > { %v463_v8 = vpop.eup %462 }
  0x2d   : > { %v269_v9 = vmul.f32 %v463_v8, %v267_v7  ;;  %vm274_vm1 = vweird.f32 %v463_v8 }
  0x2e   : > { %vm275_vm2 = vmor %vm273_vm0, %vm274_vm1 }
  0x2f   : > { %v270_v11 = vsub.f32 1.0, %v269_v9 }
  0x31   : > { %v271_v13 = vmul.f32 %v463_v8, %v270_v11 }
  0x33   : > { %v272_v15 = vadd.f32 %v463_v8, %v271_v13 }
  0x35   : > { %v276_v16 = vsel %vm275_vm2, %v463_v8, %v272_v15 }
  0x36   : > { %v281_v17 = vsel %vm278_vm3, %v280_v14, %v276_v16 }
  0x37   : > { %v285_v18 = vperm.slane %v281_v17, 0  ;;  %v286_v19 = vperm.slane %v281_v17, 1 }
  0x39   : > { %v287_v21 = vrot.slane %v286_v19, 4 }
  0x3b   : > { %v289_v22 = vsel %vm288_vm4, %v285_v18, %v287_v21 }
  0x3c   : > { %v291_v23 = vmul.f32 %v289_v22, %v283_v20 }
  0x3e   : > { %292 = vst [vmem:[%s255_s6] sm:$0xff] %v291_v23 }
  0x3f PF: > { %s14_s14 = sadd.s32 1, %s505_s14   ;;  %s576_s12 = smov %s501_s13 }
  0x40   : > { %p11_p8 = scmp.ge.s32.totalorder %s14_s14, 4   ;;  %s577_s13 = smov %s579_s16 }
  0x42   :  { %13 = sbr.rel (!%p11_p8) target bundleno = 2 (0x2), region = 70 }
  0x47   :  { %323 = vsyncpa [#allocation3], 1 }
  0x48   :  { %325 = vsyncpa [#allocation3 + $0x1], 1 }

// kernel: attention_block.3
= control target key start
LH: loop header
LB: loop body
LE: loop exit
PB: predicated region body
PF: predicated region fallthrough
CT: control target
= control target key end

     0   :  { %s582_s15 = smov 0   ;;  %s584_s16 = smov 0   ;;  %s634_s0 = inlined_call_operand.vmem [shape: f32[2,4,256], index: 0, kind: input, shape index: {}]   ;;  %s635_s1 = inlined_call_operand.vmem [shape: f32[2,4,256], index: 1, kind: input, shape index: {}]   ;;  %s636_s2 = inlined_call_operand.vmem [shape: f32[8,4], index: 2, kind: input, shape index: {}]   ;;  %s637_s3 = inlined_call_operand.vmem [shape: f32[8,4], index: 3, kind: input, shape index: {}]   ;;  %s638_s4 = inlined_call_operand.vmem [shape: f32[2,8,4], index: 4, kind: output, shape index: {}]  }
   0x1   :  { %s586_s17 = smov 0  }
   0x2 LB: > { %s26_s18 = sadd.s32 1, %s551_s16  ;;  %p491_p0 = scmp.ge.s32.totalorder %s555_s17, 1  ;;  %s555_s17 = sphi %s586_s17, %s14_s17   ;;  %s551_s16 = sphi %s584_s16, %s640_s16   ;;  %s547_s15 = sphi %s582_s15, %s639_s15  }
   0x3   : > { %p28_p1 = scmp.ge.s32.totalorder %s26_s18, 2  ;;  %p198_p2 = scmp.lt.s32.totalorder %s555_s17, 3 }
   0x5   : > { %s642_s18 = smov (%p28_p1, %s26_s18), 0  ;;  %p199_p3 = pnand %p491_p0, %p198_p2 }
   0x6   : > { %p237_p4 = scmp.lt.s32.totalorder (!%p199_p3), %s547_s15, 1 }
   0x7   : > { %202 = sbr.rel (%p199_p3) target bundleno = 293 (0x125), region = 36 }
   0xc   : > { %s644_s15 = smov (!%p237_p4, %s547_s15), 1  ;;  %vm270_vm0 = vcmask 1043456   ;;  %v260_v2 = vld [vmem:[%s636_s2] sm:$0xff]  ;;  %vm266_vm1 = vcmask 31744   ;;  %vm384_vm2 = vcmask 7168   ;;  %vm386_vm3 = vcmask 15360  }
   0xd   : > { %s600_s19 = sshll.u32 %s644_s15, 3  ;;  %v315_v5 = vld [vmem:[%s637_s3] sm:$0xff]  ;;  %vm388_vm4 = vcmask 23552  }
   0xe   : > { %s244_s22 = scalar_lea.vmem %s634_s0, %s600_s19  ;;  %s254_s25 = scalar_lea.vmem %s635_s1, %s600_s19 }
   0xf   : > { %v261_v0 = vld [vmem:[%s244_s22] sm:$0xff]  ;;  %s259_s6 = scalar_lea.vmem %s638_s4, %s600_s19 }
  0x10   : > { %263 = vst [vmem:[#allocation1] ss:$2 sm:$0xff] %v261_v0  ;;  %v316_v1 = vld [vmem:[%s254_s25] sm:$0xff] }
  0x17   : > { %v264_v3 = vld.sshfl [vmem:[#allocation1] sm:$0xff pattern:$0x75316420]  ;;  %v265_v4 = vld.sshfl [vmem:[#allocation1 + $0x8] sm:$0xff pattern:$0x75316420] }
  0x18   : > { %497 = vmatpush.msk.msra.mxu0 %vm270_vm0, %v264_v3  ;;  %499 = vmatpush.msk.msra.mxu1 %vm270_vm0, %v265_v4  ;;  %318 = vst [vmem:[#allocation1] ss:$2 sm:$0xff] %v316_v1 }
  0x19   : > { %498 = vmatmul.msk.f32.vlgmr.msra.gmra.mxu0 %vm266_vm1, %v260_v2  ;;  %500 = vmatmul.msk.f32.vlgmr.msra.gmra.mxu1 %vm266_vm1, %v260_v2 }
  0x1f   : > { %v319_v6 = vld.sshfl [vmem:[#allocation1] sm:$0xff pattern:$0x75316420]  ;;  %v320_v7 = vld.sshfl [vmem:[#allocation1 + $0x8] sm:$0xff pattern:$0x75316420] }
  0x20   : > { %501 = vmatpush.msk.msra.mxu2 %vm270_vm0, %v319_v6  ;;  %503 = vmatpush.msk.msra.mxu3 %vm270_vm0, %v320_v7 }
  0x21   : > { %502 = vmatmul.msk.f32.vlgmr.msra.gmra.mxu2 %vm266_vm1, %v315_v5  ;;  %504 = vmatmul.msk.f32.vlgmr.msra.gmra.mxu3 %vm266_vm1, %v315_v5 }
  0x96   : > { %v292_v8 = vpop.f32.mrf.mxu0  ;;  %v312_v9 = vpop.f32.mrf.mxu1 }
  0x97   : > { %v368_v10 = vadd.f32 %v312_v9, %v292_v8  ;;  %v371_v11 = vmul.f32 %v292_v8, %v292_v8  ;;  %v372_v12 = vmul.f32 %v312_v9, %v312_v9 }
  0x99   : > { %369 = vadd.xlane.f32.xlu0 %v368_v10  ;;  %v373_v13 = vadd.f32 %v372_v12, %v371_v11 }
  0xa1   : > { %374 = vadd.xlane.f32.xlu0 %v373_v13 }
  0xa4   : > { %v345_v14 = vpop.f32.mrf.mxu2  ;;  %v365_v15 = vpop.f32.mrf.mxu3 }
  0xa5   : > { %v376_v16 = vadd.f32 %v365_v15, %v345_v14  ;;  %v379_v17 = vmul.f32 %v345_v14, %v345_v14  ;;  %v380_v18 = vmul.f32 %v365_v15, %v365_v15 }
  0xa7   : > { %377 = vadd.xlane.f32.xlu1 %v376_v16  ;;  %v381_v19 = vadd.f32 %v380_v18, %v379_v17 }
  0xaf   : > { %382 = vadd.xlane.f32.xlu1 %v381_v19 }
 0x10c   : > { %v370_v20 = vpop.xlane.xlu0 %369 }
 0x114   : > { %v375_v22 = vpop.xlane.xlu0 %374 }
 0x115   : > { %v385_v23 = vsel %vm384_vm2, %v370_v20, %v375_v22 }
 0x11a   : > { %v378_v21 = vpop.xlane.xlu1 %377 }
 0x11b   : > { %v387_v24 = vsel %vm386_vm3, %v385_v23, %v378_v21 }
 0x122   : > { %v383_v25 = vpop.xlane.xlu1 %382 }
 0x123   : > { %v389_v26 = vsel %vm388_vm4, %v387_v24, %v383_v25 }
 0x124   : > { %394 = vst.msk [vmem:[%s259_s6] sm:$0xff] %vm266_vm1, %v389_v26 }
 0x125 PF: > { %s14_s17 = sadd.s32 1, %s555_s17   ;;  %s639_s15 = smov %s551_s16 }
 0x126   : > { %p11_p5 = scmp.ge.s32.totalorder %s14_s17, 4   ;;  %s640_s16 = smov %s642_s18 }
 0x128   :  { %13 = sbr.rel (!%p11_p5) target bundleno = 2 (0x2), region = 77 }

// kernel: attention_block.4
= control target key start
LH: loop header
LB: loop body
LE: loop exit
PB: predicated region body
PF: predicated region fallthrough
CT: control target
= control target key end

     0   :  { %s771_s24 = smov 0   ;;  %s773_s25 = smov 0   ;;  %s827_s0 = inlined_call_operand.vmem [shape: f32[2,4,256], index: 0, kind: input, shape index: {}]   ;;  %s828_s1 = inlined_call_operand.vmem [shape: f32[2,4,256], index: 1, kind: input, shape index: {}]   ;;  %s829_s2 = inlined_call_operand.vmem [shape: f32[8,4], index: 2, kind: input, shape index: {}]   ;;  %s830_s3 = inlined_call_operand.vmem [shape: f32[8,4], index: 3, kind: input, shape index: {}]   ;;  %s831_s4 = inlined_call_operand.vmem [shape: f32[8,1], index: 4, kind: input, shape index: {}]   ;;  %s832_s5 = inlined_call_operand.vmem [shape: f32[8,1], index: 5, kind: input, shape index: {}]   ;;  %s833_s6 = inlined_call_operand.vmem [shape: f32[2,1,256], index: 6, kind: output, shape index: {0}]   ;;  %s834_s7 = inlined_call_operand.vmem [shape: f32[2,1,2], index: 7, kind: output, shape index: {1}]  }
   0x1   :  { %s775_s26 = smov 0  }
   0x2 LB: > { %s30_s27 = sadd.s32 1, %s724_s25  ;;  %p662_p0 = scmp.ge.s32.totalorder %s728_s26, 1  ;;  %s728_s26 = sphi %s775_s26, %s18_s26   ;;  %s724_s25 = sphi %s773_s25, %s836_s25   ;;  %s720_s24 = sphi %s771_s24, %s835_s24  }
   0x3   : > { %p32_p1 = scmp.ge.s32.totalorder %s30_s27, 2  ;;  %p278_p2 = scmp.lt.s32.totalorder %s728_s26, 3 }
   0x5   : > { %s838_s27 = smov (%p32_p1, %s30_s27), 0  ;;  %p279_p3 = pnand %p662_p0, %p278_p2 }
   0x6   : > { %p330_p4 = scmp.lt.s32.totalorder (!%p279_p3), %s720_s24, 1 }
   0x7   : > { %282 = sbr.rel (%p279_p3) target bundleno = 313 (0x139), region = 44 }
   0xc   : > { %v730_v0 = vmov 0   ;;  %v469_v1 = vld [vmem:[%s831_s4] sm:$0xff]  ;;  %s840_s24 = smov (!%p330_p4, %s720_s24), 1  ;;  %vm373_vm0 = vcmask 1043456   ;;  %vm369_vm1 = vcmask 31744   ;;  %v505_v35 = vlaneseq }
   0xd   : > { %705 = vset.pattern.permute.xlu0 %v730_v0  ;;  %s678_s30 = sshll.u32 %s840_s24, 3  ;;  %v479_v3 = vld [vmem:[%s832_s5] sm:$0xff]  ;;  %s667_s20 = sshll.u32 %s840_s24, 1  ;;  %vm502_vm2 = vcmask 1040384   ;;  %vm518_vm4 = vcmask 7168   ;;  %vm524_vm5 = vcmask 8192  }
   0xe   : > { %472 = vperm.xlu0 %705, %v469_v1   ;;  %s347_s10 = scalar_lea.vmem %s828_s1, %s678_s30  ;;  %s337_s15 = scalar_lea.vmem %s827_s0, %s678_s30  ;;  %v363_v5 = vld [vmem:[%s830_s3] sm:$0xff]  ;;  %vm507_vm3 = vcmp.lt.s32.totalorder %v505_v35, 256 }
   0xf   : > { %v364_v2 = vld [vmem:[%s347_s10] sm:$0xff]  ;;  %s356_s23 = scalar_lea.vmem %s833_s6, %s667_s20  ;;  %s360_s30 = scalar_lea.vmem %s834_s7, %s840_s24 }
  0x10   : > { %366 = vst [vmem:[#allocation1] ss:$2 sm:$0xff] %v364_v2  ;;  %v362_v4 = vld [vmem:[%s337_s15] sm:$0xff] }
  0x11   : > { %v361_v8 = vld [vmem:[%s829_s2] sm:$0xff] }
  0x16   : > { %482 = vperm.xlu0 %705, %v479_v3  }
  0x17   : > { %v367_v6 = vld.sshfl [vmem:[#allocation1] sm:$0xff pattern:$0x75316420]  ;;  %v368_v7 = vld.sshfl [vmem:[#allocation1 + $0x8] sm:$0xff pattern:$0x75316420] }
  0x18   : > { %419 = vst [vmem:[#allocation1] ss:$2 sm:$0xff] %v362_v4  ;;  %668 = vmatpush.msk.msra.mxu0 %vm373_vm0, %v367_v6  ;;  %670 = vmatpush.msk.msra.mxu1 %vm373_vm0, %v368_v7 }
  0x19   : > { %669 = vmatmul.msk.f32.vlgmr.msra.gmra.mxu0 %vm369_vm1, %v363_v5  ;;  %671 = vmatmul.msk.f32.vlgmr.msra.gmra.mxu1 %vm369_vm1, %v363_v5 }
  0x1f   : > { %v420_v9 = vld.sshfl [vmem:[#allocation1] sm:$0xff pattern:$0x75316420]  ;;  %v421_v10 = vld.sshfl [vmem:[#allocation1 + $0x8] sm:$0xff pattern:$0x75316420] }
  0x20   : > { %672 = vmatpush.msk.msra.mxu2 %vm373_vm0, %v420_v9  ;;  %674 = vmatpush.msk.msra.mxu3 %vm373_vm0, %v421_v10 }
  0x21   : > { %673 = vmatmul.msk.f32.vlgmr.msra.gmra.mxu2 %vm369_vm1, %v361_v8  ;;  %675 = vmatmul.msk.f32.vlgmr.msra.gmra.mxu3 %vm369_vm1, %v361_v8 }
  0x80   : > { %v473_v11 = vpop.permute.xlu0 %472 }
  0x88   : > { %v483_v22 = vpop.permute.xlu0 %482 }
  0x96   : > { %v395_v12 = vpop.f32.mrf.mxu0  ;;  %v415_v13 = vpop.f32.mrf.mxu1 }
  0xa4   : > { %v446_v14 = vpop.f32.mrf.mxu2  ;;  %v466_v15 = vpop.f32.mrf.mxu3 }
  0xa5   : > { %v447_v16 = vadd.f32 %v446_v14, %v395_v12  ;;  %v467_v17 = vadd.f32 %v466_v15, %v415_v13 }
  0xa7   : > { %v475_v18 = vadd.f32 %v473_v11, %v447_v16  ;;  %v476_v19 = vadd.f32 %v473_v11, %v467_v17 }
  0xa9   : > { %v477_v20 = vmax.f32 %v475_v18, 0.0  ;;  %v478_v21 = vmax.f32 %v476_v19, 0.0 }
  0xab   : > { %v485_v23 = vmul.f32 %v483_v22, %v477_v20  ;;  %v486_v24 = vmul.f32 %v483_v22, %v478_v21 }
  0xad   : > { %v487_v25 = vrot.slane %v485_v23, 4  ;;  %v493_v26 = vrot.slane %v486_v24, 4 }
  0xaf   : > { %v488_v27 = vadd.f32 %v487_v25, %v485_v23  ;;  %v494_v28 = vadd.f32 %v493_v26, %v486_v24 }
  0xb1   : > { %v489_v29 = vrot.slane %v488_v27, 2  ;;  %v495_v30 = vrot.slane %v494_v28, 2 }
  0xb3   : > { %v490_v31 = vadd.f32 %v489_v29, %v488_v27  ;;  %v496_v32 = vadd.f32 %v495_v30, %v494_v28 }
  0xb5   : > { %v491_v33 = vrot.slane %v490_v31, 1  ;;  %v497_v34 = vrot.slane %v496_v32, 1 }
  0xb7   : > { %v492_v36 = vadd.f32 %v491_v33, %v490_v31  ;;  %v498_v37 = vadd.f32 %v497_v34, %v496_v32 }
  0xb9   : > { %v501_v38 = vrot.slane %v498_v37, 7  ;;  %v510_v39 = vadd.f32 %v498_v37, %v492_v36  ;;  %v513_v41 = vmul.f32 %v492_v36, %v492_v36  ;;  %v514_v42 = vmul.f32 %v498_v37, %v498_v37 }
  0xbb   : > { %511 = vadd.xlane.f32.xlu1 %v510_v39  ;;  %v503_v40 = vsel %vm502_vm2, %v492_v36, %v501_v38  ;;  %v515_v43 = vadd.f32 %v514_v42, %v513_v41 }
  0xbc   : > { %509 = vst.msk [vmem:[%s356_s23] sm:$0x3] %vm507_vm3, %v503_v40 }
  0xc3   : > { %516 = vadd.xlane.f32.xlu1 %v515_v43 }
 0x12e   : > { %v512_v44 = vpop.xlane.xlu1 %511 }
 0x136   : > { %v517_v45 = vpop.xlane.xlu1 %516 }
 0x137   : > { %v519_v46 = vsel %vm518_vm4, %v512_v44, %v517_v45 }
 0x138   : > { %525 = vst.msk [vmem:[%s360_s30] sm:$0x1] %vm524_vm5, %v519_v46 }
 0x139 PF: > { %s18_s26 = sadd.s32 1, %s728_s26   ;;  %s835_s24 = smov %s724_s25 }
 0x13a   : > { %p15_p5 = scmp.ge.s32.totalorder %s18_s26, 4   ;;  %s836_s25 = smov %s838_s27 }
 0x13c   :  { %17 = sbr.rel (!%p15_p5) target bundleno = 2 (0x2), region = 97 }

</bundles_post_ra>
